<compile_context>
chip_gen: v6e
topology: v6e:2x2x1
jax: 0.10.0
libtpu: 0.0.40
codegen_flags: <defaults>
</compile_context>

<pallas_src>
import jax
import jax.numpy as jnp
from jax.experimental import pallas as pl
from jax.experimental.pallas import tpu as pltpu


def actor_kernel(x_ref, w1_ref, b1_ref, w2_ref, b2_ref, w3_ref, b3_ref,
                 scale_ref, eps_ref, out_ref):
    """Feature-major MLP tile: every activation is [features, tb], so the
    batch occupies the lane axis (lane-dense loads/stores)."""
    wdt = w1_ref.dtype                          # bf16 weights, f32 accumulation
    x = x_ref[...].astype(wdt)                  # [nS, tb]

    # input_layer + relu -> [h1, tb]
    h1 = jnp.dot(w1_ref[...], x,
                 preferred_element_type=jnp.float32) + b1_ref[...]
    h1 = jnp.maximum(h1, 0.0)

    # fc1 + relu -> [h2, tb]
    h2 = jnp.dot(w2_ref[...], h1.astype(wdt),
                 preferred_element_type=jnp.float32) + b2_ref[...]
    h2 = jnp.maximum(h2, 0.0)

    # output_layer + tanh -> mean : [nA, tb]
    mean = jnp.tanh(jnp.dot(w3_ref[...], h2.astype(wdt),
                            preferred_element_type=jnp.float32) + b3_ref[...])

    # Normal(mean, softplus(std)).sample() with explicit standard-normal eps.
    # TODO(synk): optional in-kernel sampling (pltpu.prng_seed(seed +
    # pl.program_id(0)) + pltpu.prng_random_bits + Box-Muller) would drop the
    # eps DMA (~25% of HBM traffic); kept explicit so sampling stays
    # deterministic and checkable against the pure-JAX reference.
    out_ref[...] = mean + scale_ref[...] * eps_ref[...]


def _round_up(x, m):
    return (x + m - 1) // m * m


def actor_forward(x, params, eps, *, block_b=1024, min_grid=4):
    """x: [B, nS] f32 states, eps: [B, nA] f32 N(0,1) noise -> [B, nA] actions."""
    B, nS = x.shape
    h1 = params["w1"].shape[0]
    h2 = params["w2"].shape[0]
    nA = params["w3"].shape[0]

    # Batch-independent and numerically fragile in naive form -> computed once,
    # stably, outside the kernel.
    scale = jax.nn.softplus(params["std"].astype(jnp.float32))      # [nA, 1]

    x_t = x.T                       # [nS, B]  feature-major (batch on lanes)
    eps_t = eps.T                   # [nA, B]

    # Lane-dense batch tile: multiple of 128, large enough to amortize the
    # per-grid-step overhead, capped so the grid keeps >= min_grid steps
    # (both v7x TensorCores get work via the "parallel" batch axis).
    tb = min(block_b, _round_up(pl.cdiv(B, min_grid), 128))
    tb = max(tb, 128)
    tb = min(tb, _round_up(B, 128))
    grid = (pl.cdiv(B, tb),)

    const = lambda i: (0, 0)        # resident in VMEM across all grid steps
    batched = lambda i: (0, i)      # walk the batch (lane) axis

    in_specs = [
        pl.BlockSpec((nS, tb), batched),     # x^T
        pl.BlockSpec((h1, nS), const),       # w1 [out, in] (bf16, resident)
        pl.BlockSpec((h1, 1), const),        # b1
        pl.BlockSpec((h2, h1), const),       # w2
        pl.BlockSpec((h2, 1), const),        # b2
        pl.BlockSpec((nA, h2), const),       # w3
        pl.BlockSpec((nA, 1), const),        # b3
        pl.BlockSpec((nA, 1), const),        # softplus(std)
        pl.BlockSpec((nA, tb), batched),     # eps^T
    ]
    out_spec = pl.BlockSpec((nA, tb), batched)

    out_t = pl.pallas_call(
        actor_kernel,
        out_shape=jax.ShapeDtypeStruct((nA, B), jnp.float32),
        grid=grid,
        in_specs=in_specs,
        out_specs=out_spec,
        compiler_params=pltpu.CompilerParams(
            dimension_semantics=("parallel",),   # v7x: shard batch tiles over 2 TCs
            vmem_limit_bytes=32 * 1024 * 1024,   # generation-safe (v7x: 64 MiB phys)
        ),
    )(x_t, params["w1"], params["b1"], params["w2"], params["b2"],
      params["w3"], params["b3"], scale, eps_t)

    return out_t.T                               # [B, nA]


def init_actor_params(key, nS, nA, hidden_dims=(64, 64),
                      weights_dtype=jnp.bfloat16):
    """Mirrors the PyTorch Actor's reset_parameters:
      hidden weights ~ U(-1/sqrt(fan), 1/sqrt(fan)) with fan = weight.size()[0]
      (= out_features for nn.Linear), output weights ~ U(-3e-3, 3e-3),
      biases keep nn.Linear's default U(-1/sqrt(fan_in), 1/sqrt(fan_in)),
      std = zeros.
    Weights stored [out, in] (same as nn.Linear.weight); biases/std stored
    [out, 1] so the feature-major kernel broadcasts them along lanes."""
    h1, h2 = hidden_dims
    ks = jax.random.split(key, 6)

    def uniform(k, shape, lim):
        return jax.random.uniform(k, shape, jnp.float32, -lim, lim)

    lim1 = 1.0 / jnp.sqrt(jnp.float32(h1))
    lim2 = 1.0 / jnp.sqrt(jnp.float32(h2))
    return {
        "w1": uniform(ks[0], (h1, nS), lim1).astype(weights_dtype),
        "b1": uniform(ks[1], (h1, 1), 1.0 / jnp.sqrt(jnp.float32(nS))),
        "w2": uniform(ks[2], (h2, h1), lim2).astype(weights_dtype),
        "b2": uniform(ks[3], (h2, 1), 1.0 / jnp.sqrt(jnp.float32(h1))),
        "w3": uniform(ks[4], (nA, h2), 0.003).astype(weights_dtype),
        "b3": uniform(ks[5], (nA, 1), 1.0 / jnp.sqrt(jnp.float32(h2))),
        "std": jnp.zeros((nA, 1), jnp.float32),
    }


def actor_reference(x, params, eps):
    """Pure-JAX reference using the exact same orientation/dtype path as the
    kernel (bf16 weights will not bit-match an f32 PyTorch Actor; deviation is
    at the ~1e-3 level)."""
    wdt = params["w1"].dtype
    xt = x.T.astype(wdt)
    h1 = jnp.maximum(jnp.dot(params["w1"], xt,
                             preferred_element_type=jnp.float32)
                     + params["b1"], 0.0)
    h2 = jnp.maximum(jnp.dot(params["w2"], h1.astype(wdt),
                             preferred_element_type=jnp.float32)
                     + params["b2"], 0.0)
    mean = jnp.tanh(jnp.dot(params["w3"], h2.astype(wdt),
                            preferred_element_type=jnp.float32)
                    + params["b3"])
    return (mean + jax.nn.softplus(params["std"]) * eps.T).T


if __name__ == "__main__":
    key = jax.random.PRNGKey(0)
    k_param, k_state, k_eps, k_state2, k_eps2 = jax.random.split(key, 5)

    nS, nA = 8, 4
    params = init_actor_params(k_param, nS, nA, hidden_dims=(64, 64))

    # Rollout-slab call: exercises a >128-lane tile (tb=512) and a partial
    # last tile (1920 = 3*512 + 384).
    B = 1920
    state = jax.random.normal(k_state, (B, nS), jnp.float32)
    eps = jax.random.normal(k_eps, (B, nA), jnp.float32)
    action = actor_forward(state, params, eps)
    jax.block_until_ready(action)
    ref = actor_reference(state, params, eps)
    assert action.shape == (B, nA)
    assert jnp.allclose(action, ref, atol=2e-3, rtol=2e-3)

    # Single-env-step call (B=2): same wrapper, one partial 128-lane tile.
    state2 = jax.random.normal(k_state2, (2, nS), jnp.float32)
    eps2 = jax.random.normal(k_eps2, (2, nA), jnp.float32)
    action2 = actor_forward(state2, params, eps2)
    jax.block_until_ready(action2)
    ref2 = actor_reference(state2, params, eps2)
    assert action2.shape == (2, nA)
    assert jnp.allclose(action2, ref2, atol=2e-3, rtol=2e-3)

    print("KERNEL_OK")
</pallas_src>

<mosaic_0001>
module attributes {stable_mosaic.version = 11 : i64} {
  func.func @actor_kernel(%arg0: i32, %arg1: memref<8x512xf32, #tpu.memory_space<vmem>>, %arg2: memref<64x8xbf16, #tpu.memory_space<vmem>>, %arg3: memref<64x1xf32, #tpu.memory_space<vmem>>, %arg4: memref<64x64xbf16, #tpu.memory_space<vmem>>, %arg5: memref<64x1xf32, #tpu.memory_space<vmem>>, %arg6: memref<4x64xbf16, #tpu.memory_space<vmem>>, %arg7: memref<4x1xf32, #tpu.memory_space<vmem>>, %arg8: memref<4x1xf32, #tpu.memory_space<vmem>>, %arg9: memref<4x512xf32, #tpu.memory_space<vmem>>, %arg10: memref<4x512xf32, #tpu.memory_space<vmem>>) attributes {dimension_semantics = [#tpu.dimension_semantics<parallel>], iteration_bounds = array<i64: 4>, scalar_prefetch = 0 : i64, scratch_operands = 0 : i64, tpu.core_type = #tpu.core_type<tc>, window_params = [{transform_indices = @transform_0, window_bounds = array<i64: 8, 512>}, {pipeline_mode = #tpu.pipeline_mode<synchronous>, transform_indices = @transform_1, window_bounds = array<i64: 64, 8>}, {pipeline_mode = #tpu.pipeline_mode<synchronous>, transform_indices = @transform_2, window_bounds = array<i64: 64, 1>}, {pipeline_mode = #tpu.pipeline_mode<synchronous>, transform_indices = @transform_3, window_bounds = array<i64: 64, 64>}, {pipeline_mode = #tpu.pipeline_mode<synchronous>, transform_indices = @transform_4, window_bounds = array<i64: 64, 1>}, {pipeline_mode = #tpu.pipeline_mode<synchronous>, transform_indices = @transform_5, window_bounds = array<i64: 4, 64>}, {pipeline_mode = #tpu.pipeline_mode<synchronous>, transform_indices = @transform_6, window_bounds = array<i64: 4, 1>}, {pipeline_mode = #tpu.pipeline_mode<synchronous>, transform_indices = @transform_7, window_bounds = array<i64: 4, 1>}, {transform_indices = @transform_8, window_bounds = array<i64: 4, 512>}, {transform_indices = @transform_9, window_bounds = array<i64: 4, 512>}]} {
    %c0 = arith.constant 0 : index
    %c0_0 = arith.constant 0 : index
    %0 = vector.load %arg1[%c0, %c0_0] : memref<8x512xf32, #tpu.memory_space<vmem>>, vector<8x512xf32>
    %1 = arith.truncf %0 : vector<8x512xf32> to vector<8x512xbf16>
    %c0_1 = arith.constant 0 : index
    %c0_2 = arith.constant 0 : index
    %2 = vector.load %arg2[%c0_1, %c0_2] : memref<64x8xbf16, #tpu.memory_space<vmem>>, vector<64x8xbf16>
    %cst = arith.constant dense<0.000000e+00> : vector<64x512xf32>
    %3 = tpu.matmul %2, %1, %cst {dimension_numbers = #tpu.dot_dimension_numbers<[1], [0], [0], [1], [0, 0, 1, 1], [], []>} : vector<64x8xbf16>, vector<8x512xbf16>, vector<64x512xf32> -> vector<64x512xf32>
    %c0_3 = arith.constant 0 : index
    %c0_4 = arith.constant 0 : index
    %4 = vector.load %arg3[%c0_3, %c0_4] : memref<64x1xf32, #tpu.memory_space<vmem>>, vector<64x1xf32>
    %5 = vector.broadcast %4 : vector<64x1xf32> to vector<64x512xf32>
    %6 = arith.addf %3, %5 : vector<64x512xf32>
    %cst_5 = arith.constant 0.000000e+00 : f32
    %7 = vector.broadcast %cst_5 : f32 to vector<64x512xf32>
    %8 = arith.maximumf %6, %7 : vector<64x512xf32>
    %c0_6 = arith.constant 0 : index
    %c0_7 = arith.constant 0 : index
    %9 = vector.load %arg4[%c0_6, %c0_7] : memref<64x64xbf16, #tpu.memory_space<vmem>>, vector<64x64xbf16>
    %10 = arith.truncf %8 : vector<64x512xf32> to vector<64x512xbf16>
    %cst_8 = arith.constant dense<0.000000e+00> : vector<64x512xf32>
    %11 = tpu.matmul %9, %10, %cst_8 {dimension_numbers = #tpu.dot_dimension_numbers<[1], [0], [0], [1], [0, 0, 1, 1], [], []>} : vector<64x64xbf16>, vector<64x512xbf16>, vector<64x512xf32> -> vector<64x512xf32>
    %c0_9 = arith.constant 0 : index
    %c0_10 = arith.constant 0 : index
    %12 = vector.load %arg5[%c0_9, %c0_10] : memref<64x1xf32, #tpu.memory_space<vmem>>, vector<64x1xf32>
    %13 = vector.broadcast %12 : vector<64x1xf32> to vector<64x512xf32>
    %14 = arith.addf %11, %13 : vector<64x512xf32>
    %cst_11 = arith.constant 0.000000e+00 : f32
    %15 = vector.broadcast %cst_11 : f32 to vector<64x512xf32>
    %16 = arith.maximumf %14, %15 : vector<64x512xf32>
    %c0_12 = arith.constant 0 : index
    %c0_13 = arith.constant 0 : index
    %17 = vector.load %arg6[%c0_12, %c0_13] : memref<4x64xbf16, #tpu.memory_space<vmem>>, vector<4x64xbf16>
    %18 = arith.truncf %16 : vector<64x512xf32> to vector<64x512xbf16>
    %cst_14 = arith.constant dense<0.000000e+00> : vector<4x512xf32>
    %19 = tpu.matmul %17, %18, %cst_14 {dimension_numbers = #tpu.dot_dimension_numbers<[1], [0], [0], [1], [0, 0, 1, 1], [], []>} : vector<4x64xbf16>, vector<64x512xbf16>, vector<4x512xf32> -> vector<4x512xf32>
    %c0_15 = arith.constant 0 : index
    %c0_16 = arith.constant 0 : index
    %20 = vector.load %arg7[%c0_15, %c0_16] : memref<4x1xf32, #tpu.memory_space<vmem>>, vector<4x1xf32>
    %21 = vector.broadcast %20 : vector<4x1xf32> to vector<4x512xf32>
    %22 = arith.addf %19, %21 : vector<4x512xf32>
    %23 = math.tanh %22 : vector<4x512xf32>
    %c0_17 = arith.constant 0 : index
    %c0_18 = arith.constant 0 : index
    %24 = vector.load %arg8[%c0_17, %c0_18] : memref<4x1xf32, #tpu.memory_space<vmem>>, vector<4x1xf32>
    %c0_19 = arith.constant 0 : index
    %c0_20 = arith.constant 0 : index
    %25 = vector.load %arg9[%c0_19, %c0_20] : memref<4x512xf32, #tpu.memory_space<vmem>>, vector<4x512xf32>
    %26 = vector.broadcast %24 : vector<4x1xf32> to vector<4x512xf32>
    %27 = arith.mulf %26, %25 : vector<4x512xf32>
    %28 = arith.addf %23, %27 : vector<4x512xf32>
    %c0_21 = arith.constant 0 : index
    %c0_22 = arith.constant 0 : index
    %29 = vector.load %arg10[%c0_21, %c0_22] : memref<4x512xf32, #tpu.memory_space<vmem>>, vector<4x512xf32>
    tpu.vector_store %arg10[%c0_21, %c0_22], %28 {strides = array<i32>} : memref<4x512xf32, #tpu.memory_space<vmem>>, vector<4x512xf32>,
    return
  }
  func.func @transform_0(%arg0: i32) -> (i32, i32) {
    %c0_i32 = arith.constant 0 : i32
    %c0_i32_0 = arith.constant 0 : i32
    return %c0_i32, %arg0 : i32, i32
  }
  func.func @transform_1(%arg0: i32) -> (i32, i32) {
    %c0_i32 = arith.constant 0 : i32
    %c0_i32_0 = arith.constant 0 : i32
    %c0_i32_1 = arith.constant 0 : i32
    return %c0_i32, %c0_i32_0 : i32, i32
  }
  func.func @transform_2(%arg0: i32) -> (i32, i32) {
    %c0_i32 = arith.constant 0 : i32
    %c0_i32_0 = arith.constant 0 : i32
    %c0_i32_1 = arith.constant 0 : i32
    return %c0_i32, %c0_i32_0 : i32, i32
  }
  func.func @transform_3(%arg0: i32) -> (i32, i32) {
    %c0_i32 = arith.constant 0 : i32
    %c0_i32_0 = arith.constant 0 : i32
    %c0_i32_1 = arith.constant 0 : i32
    return %c0_i32, %c0_i32_0 : i32, i32
  }
  func.func @transform_4(%arg0: i32) -> (i32, i32) {
    %c0_i32 = arith.constant 0 : i32
    %c0_i32_0 = arith.constant 0 : i32
    %c0_i32_1 = arith.constant 0 : i32
    return %c0_i32, %c0_i32_0 : i32, i32
  }
  func.func @transform_5(%arg0: i32) -> (i32, i32) {
    %c0_i32 = arith.constant 0 : i32
    %c0_i32_0 = arith.constant 0 : i32
    %c0_i32_1 = arith.constant 0 : i32
    return %c0_i32, %c0_i32_0 : i32, i32
  }
  func.func @transform_6(%arg0: i32) -> (i32, i32) {
    %c0_i32 = arith.constant 0 : i32
    %c0_i32_0 = arith.constant 0 : i32
    %c0_i32_1 = arith.constant 0 : i32
    return %c0_i32, %c0_i32_0 : i32, i32
  }
  func.func @transform_7(%arg0: i32) -> (i32, i32) {
    %c0_i32 = arith.constant 0 : i32
    %c0_i32_0 = arith.constant 0 : i32
    %c0_i32_1 = arith.constant 0 : i32
    return %c0_i32, %c0_i32_0 : i32, i32
  }
  func.func @transform_8(%arg0: i32) -> (i32, i32) {
    %c0_i32 = arith.constant 0 : i32
    %c0_i32_0 = arith.constant 0 : i32
    return %c0_i32, %arg0 : i32, i32
  }
  func.func @transform_9(%arg0: i32) -> (i32, i32) {
    %c0_i32 = arith.constant 0 : i32
    %c0_i32_0 = arith.constant 0 : i32
    return %c0_i32, %arg0 : i32, i32
  }
}

</mosaic_0001>

<bundles_post_ra>
// kernel: tpu_custom_call.1
= control target key start
LH: loop header
LB: loop body
LE: loop exit
PB: predicated region body
PF: predicated region fallthrough
CT: control target
= control target key end

     0   :  { %14 = vsyncpa [#allocation3], 0  ;;  %s1881_s0 = inlined_call_operand.vmem [shape: f32[8,1920], index: 0, kind: input, shape index: {}]   ;;  %s1882_s1 = inlined_call_operand.vmem [shape: bf16[64,8], index: 1, kind: input, shape index: {}]   ;;  %s1883_s2 = inlined_call_operand.vmem [shape: f32[64,1], index: 2, kind: input, shape index: {}]   ;;  %s1884_s3 = inlined_call_operand.hbm [shape: bf16[64,64], index: 3, kind: input, shape index: {}]   ;;  %s1885_s4 = inlined_call_operand.vmem [shape: f32[64,1], index: 4, kind: input, shape index: {}]   ;;  %s1886_s5 = inlined_call_operand.vmem [shape: bf16[4,64], index: 5, kind: input, shape index: {}]   ;;  %s1887_s6 = inlined_call_operand.vmem [shape: f32[4,1], index: 6, kind: input, shape index: {}]   ;;  %s1888_s7 = inlined_call_operand.vmem [shape: f32[4,1], index: 7, kind: input, shape index: {}]   ;;  %s1889_s8 = inlined_call_operand.vmem [shape: f32[4,1920], index: 8, kind: input, shape index: {}]   ;;  %s1890_s9 = inlined_call_operand.hbm [shape: f32[4,1920], index: 9, kind: output, shape index: {}]  }
   0x1   :  { %15 = vsyncpa [#allocation4], 0 }
   0x2   :  { %17 = vsyncpa [#allocation4 + $0x1], 0  ;;  %s1503_s30 = smov 0   ;;  %s1505_s10 = smov 0  }
   0x3   :  { %s1507_s11 = smov 0   ;;  %s1509_s12 = smov 0  }
   0x4 LB: > { %s1524_s13 = sadd.s32 4294967295, %s1446_s12   ;;  %s1235_s14 = sadd.s32 4294967294, %s1446_s12   ;;  %s1446_s12 = sphi %s1509_s12, %s1898_s12   ;;  %s1442_s11 = sphi %s1507_s11, %s1897_s11   ;;  %s1438_s10 = sphi %s1505_s10, %s1896_s10   ;;  %s1434_s30 = sphi %s1503_s30, %s1895_s30  }
   0x5   : > { %s1528_s15 = sadd.s32 1, %s1446_s12   ;;  %s229_s16 = sadd.s32 1, %s1442_s11 }
   0x6   : > { %s226_s17 = ssub.s32 %s1446_s12, %s1528_s15  ;;  %p239_p0 = scmp.ne.s32.totalorder %s1442_s11, %s1438_s10 }
   0x7   : > { %p227_p1 = scmp.eq.s32.totalorder %s226_s17, 0  ;;  %p240_p2 = scmp.eq.s32.totalorder %s1524_s13, 3 }
   0x8   : > { %p245_p3 = scmp.ne.s32.totalorder %s1438_s10, %s1434_s30  ;;  %p246_p4 = scmp.eq.s32.totalorder %s1235_s14, 3 }
   0x9   : > { %s1539_s18 = scalar_select %p227_p1, %s1442_s11, %s229_s16  }
   0xa   : > { %p1541_p5 = por %p240_p2, %p239_p0  ;;  %p1545_p6 = por %p246_p4, %p245_p3 }
   0xb   : > { %p1236_p7 = scmp.ge.s32.totalorder %s1446_s12, 1  ;;  %p253_p8 = scmp.lt.s32.totalorder %s1446_s12, 5 }
   0xc   : > { %s1892_s20 = scalar_select %p1545_p6, 1, 0 }
   0xd   : > { %p1297_p9 = scmp.eq.s32.totalorder %s1524_s13, 0  ;;  %p1552_p10 = pnand %p1236_p7, %p253_p8 }
   0xe   : > { %s1448_s22 = smov [#allocation2]  }
   0xf   : > { %s271_s23 = sshll.u32 %s1448_s22, 4  ;;  %p1289_p11 = pneg %p1552_p10  ;;  %s272_s23 = int_to_ptr.vmem [resolvable:$true] %s271_s23 }
  0x10   : > { %s1367_s24 = scalar_lea.vmem %s272_s23, 512  ;;  %p1375_p3 = scmp.lt.s32.totalorder %s272_s23, %s272_s23 }
  0x11   : > { %p1290_p12 = pnand %p1297_p9, %p1289_p11  ;;  %p1368_p0 = scmp.ne.s32.totalorder %s272_s23, %s1367_s24 }
  0x12   : > { %p1376_p4 = scmp.lt.s32.totalorder %s1367_s24, %s1367_s24 }
  0x13   : > { %p1358_p13 = pneg %p1290_p12 }
  0x14   : > { %p1377_p6 = por %p1376_p4, %p1375_p3 }
  0x15   : > { %p1370_p1 = pnand %p1368_p0, %p1358_p13 }
  0x17   : > { %p1371_p2 = pneg %p1370_p1 }
  0x19   : > { %p1378_p7 = pnand %p1377_p6, %p1371_p2 }
  0x1b   : > { %1381 = shalt.err (!%p1378_p7)
}
  0x1c   : > { %s1449_s25 = smov 64   ;;  %s1450_s26 = smov 4  }
  0x1d   : > { %1292 = dma.hbm_to_vmem [thread:$0]  (!%p1290_p12), %s1884_s3, 512, %s272_s23, [#allocation3], %s1449_s25, %s1449_s25, %s1450_s26  }
  0x1e   : > { %333 = sbr.rel (%p1552_p10) target bundleno = 783 (0x30f), region = 56 }
  0x23   : > { %1425 = dma.done.wait (%p1297_p9), [#allocation3], 512  }
  0x24   : > { %1427 = vsyncadd (%p1297_p9), [#allocation3], 4294966784  ;;  %s1570_s29 = sshll.u32 %s1524_s13, 2  ;;  %v1451_v0 = vmov 0   ;;  %vm513_vm0 = vcmask 1043456   ;;  %v1338_v10 = vld [vmem:[%s1882_s1] sm:$0xff]  }
  0x25   : > { %p387_p6 = scmp.lt.s32.totalorder %s1570_s29, 14  ;;  %558 = vmatprep.mubr.bf16.mxu0 %v1451_v0  ;;  %631 = vmatprep.mubr.bf16.mxu1 %v1451_v0  ;;  %vm500_vm1 = vcmask 64512   ;;  %v438_v12 = vld [vmem:[%s1883_s2 + $0x30] sm:$0xff]  ;;  %v436_v13 = vld [vmem:[%s1883_s2 + $0x20] sm:$0xff]  ;;  %v439_v14 = vld [vmem:[%s1883_s2 + $0x38] sm:$0xff]  ;;  %vm796_vm2 = vcmask 523264  }
  0x26   : > { %1336 = vset.pattern.permute.xlu0 %v1451_v0  ;;  %1337 = vset.pattern.permute.xlu1 %v1451_v0  ;;  %v437_v15 = vld [vmem:[%s1883_s2 + $0x28] sm:$0xff]  ;;  %v434_v17 = vld [vmem:[%s1883_s2 + $0x10] sm:$0xff]  ;;  %v435_v18 = vld [vmem:[%s1883_s2 + $0x18] sm:$0xff]  ;;  %s1140_s26 = ssub.s32 (%p1541_p5), 15, %s1570_s29 }
  0x27   : > { %s1578_s14 = scalar_select %p387_p6, %s1570_s29, 14  ;;  %472 = vperm.xlu0 %1336, %v438_v12   ;;  %462 = vperm.xlu1 %1337, %v436_v13   ;;  %v1339_v16 = vld [vmem:[%s1882_s1 + $0x8] sm:$0xff]   ;;  %v432_v19 = vld [vmem:[%s1883_s2] sm:$0xff]  ;;  %v1340_v21 = vld [vmem:[%s1882_s1 + $0x10] sm:$0xff]  }
  0x28   : > { %v433_v20 = vld [vmem:[%s1883_s2 + $0x8] sm:$0xff]  ;;  %v734_v22 = vld [vmem:[%s1885_s4 + $0x30] sm:$0xff]  ;;  %v735_v23 = vld [vmem:[%s1885_s4 + $0x38] sm:$0xff]  ;;  %p1141_p8 = scmp.lt.s32.totalorder (%p1541_p5), %s1140_s26, 4 }
  0x29   : > { %s1243_s16 = sshll.u32 %s1578_s14, 3  ;;  %v732_v24 = vld [vmem:[%s1885_s4 + $0x20] sm:$0xff]  ;;  %v733_v25 = vld [vmem:[%s1885_s4 + $0x28] sm:$0xff]  ;;  %v1341_v26 = vld [vmem:[%s1882_s1 + $0x18] sm:$0xff]   ;;  %s1245_s17 = sshll.u32 %s1578_s14, 2 }
  0x2a   : > { %s390_s22 = scalar_lea.vmem %s1881_s0, %s1243_s16  ;;  %v730_v27 = vld [vmem:[%s1885_s4 + $0x10] sm:$0xff]  ;;  %v731_v28 = vld [vmem:[%s1885_s4 + $0x18] sm:$0xff]  ;;  %v728_v29 = vld [vmem:[%s1885_s4] sm:$0xff]  ;;  %s379_s16 = sand.u32 1, %s1438_s10  }
  0x2b   : > { %v417_v1 = vld [vmem:[%s390_s22 + $0x8] sm:$0xff]  ;;  %v419_v2 = vld [vmem:[%s390_s22 + $0x18] sm:$0xff]  ;;  %v416_v3 = vld [vmem:[%s390_s22] sm:$0xff]  ;;  %477 = vperm.xlu0 %1336, %v439_v14   ;;  %467 = vperm.xlu1 %1337, %v437_v15   ;;  %s404_s23 = scalar_lea.vmem %s1889_s8, %s1245_s17  ;;  %s1241_s14 = sshll.u32 %s379_s16, 4 }
  0x2c   : > { %v421_v4 = vpack.c.bf16 %v417_v1, %v417_v1  ;;  %v423_v5 = vpack.c.bf16 %v419_v2, %v419_v2  ;;  %v420_v6 = vpack.c.bf16 %v416_v3, %v416_v3  ;;  %v418_v7 = vld [vmem:[%s390_s22 + $0x10] sm:$0xff]  ;;  %v729_v30 = vld [vmem:[%s1885_s4 + $0x8] sm:$0xff]  ;;  %v1004_v31 = vld [vmem:[%s1887_s6] sm:$0xf]  ;;  %s381_s24 = scalar_lea.vmem [#allocation5], %s1241_s14  ;;  %s1834_s25 = scalar_lea.sflag [#allocation4], %s379_s16 }
  0x2d   : > { %v422_v8 = vpack.c.bf16 %v418_v7, %v418_v7  ;;  %v1099_v32 = vld [vmem:[%s1888_s7] sm:$0xf] }
  0x2e   : > { %1250 = vmatprep.subr.msk.bf16.mxu0 %vm513_vm0, %v421_v4  ;;  %1255 = vmatprep.subr.msk.bf16.mxu1 %vm513_vm0, %v423_v5  ;;  %v515_v9 = vsel %vm513_vm0, %v420_v6, 0 }
  0x2f   : > { %541 = vmatpush1.bf16.msra.mxu0 %v515_v9  ;;  %v521_v11 = vsel %vm513_vm0, %v422_v8, 0  ;;  %452 = vperm.xlu0 %1336, %v434_v17  }
  0x30   : > { %614 = vmatpush1.bf16.msra.mxu1 %v521_v11  ;;  %457 = vperm.xlu1 %1337, %v435_v18  }
  0x32   : > { %1251 = vmatmul.mubr.msk.bf16.vlgmr.msra.gmra.mxu0 %vm500_vm1, %v1338_v10 }
  0x33   : > { %1256 = vmatmul.mubr.msk.bf16.vlgmr.msra.gmra.mxu1 %vm500_vm1, %v1338_v10  ;;  %568 = vmatprep.mubr.bf16.mxu0 %v1451_v0 }
  0x34   : > { %641 = vmatprep.mubr.bf16.mxu1 %v1451_v0  ;;  %442 = vperm.xlu0 %1336, %v432_v19  }
  0x35   : > { %447 = vperm.xlu1 %1337, %v433_v20  }
  0x38   : > { %768 = vperm.xlu0 %1336, %v734_v22  }
  0x39   : > { %773 = vperm.xlu1 %1337, %v735_v23  }
  0x3a   : > { %1252 = vmatmul.mubr.msk.bf16.gmra.mxu0 %vm500_vm1, %v1339_v16 }
  0x3b   : > { %1257 = vmatmul.mubr.msk.bf16.gmra.mxu1 %vm500_vm1, %v1339_v16  ;;  %578 = vmatprep.mubr.bf16.mxu0 %v1451_v0 }
  0x3c   : > { %651 = vmatprep.mubr.bf16.mxu1 %v1451_v0  ;;  %758 = vperm.xlu0 %1336, %v732_v24  }
  0x3d   : > { %763 = vperm.xlu1 %1337, %v733_v25  }
  0x40   : > { %748 = vperm.xlu0 %1336, %v730_v27  }
  0x41   : > { %753 = vperm.xlu1 %1337, %v731_v28  }
  0x42   : > { %1253 = vmatmul.mubr.msk.bf16.gmra.mxu0 %vm500_vm1, %v1340_v21 }
  0x43   : > { %1258 = vmatmul.mubr.msk.bf16.gmra.mxu1 %vm500_vm1, %v1340_v21  ;;  %588 = vmatprep.mubr.bf16.mxu0 %v1451_v0 }
  0x44   : > { %661 = vmatprep.mubr.bf16.mxu1 %v1451_v0  ;;  %738 = vperm.xlu0 %1336, %v728_v29  }
  0x45   : > { %743 = vperm.xlu1 %1337, %v729_v30  }
  0x48   : > { %1007 = vperm.xlu0 %1336, %v1004_v31  }
  0x49   : > { %1104 = vperm.xlu1 %1337, %v1099_v32  }
  0x4a   : > { %1254 = vmatmul.mubr.msk.bf16.gmra.mxu0 %vm500_vm1, %v1341_v26 }
  0x4b   : > { %1259 = vmatmul.mubr.msk.bf16.gmra.mxu1 %vm500_vm1, %v1341_v26  ;;  %841 = vmatprep.mubr.bf16.mxu0 %v1451_v0 }
  0x4c   : > { %914 = vmatprep.mubr.bf16.mxu1 %v1451_v0 }
  0xa2   : > { %v473_v40 = vpop.permute.xlu0 %472  ;;  %v1674_v42 = vpop.permute.xlu1 %462 }
  0xa6   : > { %v478_v48 = vpop.permute.xlu0 %477  ;;  %v468_v50 = vpop.permute.xlu1 %467 }
  0xaa   : > { %v1680_v56 = vpop.permute.xlu0 %452 }
  0xab   : > { %v458_v58 = vpop.permute.xlu1 %457 }
  0xaf   : > { %v1682_v1 = vpop.permute.xlu0 %442 }
  0xb0   : > { %v1690_v5 = vpop.permute.xlu1 %447 }
  0xf2   : > { %v1666_v33 = vpop.f32.mrf.mxu0 }
  0xf3   : > { %v1668_v34 = vpop.f32.mrf.mxu1 }
  0xf4   : > { %v562_v35 = vpop.f32.mrf.mxu0 }
  0xf5   : > { %v635_v36 = vpop.f32.mrf.mxu1  ;;  %v1685_v3 = vadd.f32 %v562_v35, %v1682_v1 }
  0xf6   : > { %v1670_v37 = vpop.f32.mrf.mxu0  ;;  %v1688_v4 = vadd.f32 %v635_v36, %v1682_v1 }
  0xf7   : > { %v1672_v38 = vpop.f32.mrf.mxu1 }
  0xf8   : > { %v566_v39 = vpop.f32.mrf.mxu0 }
  0xf9   : > { %v639_v41 = vpop.f32.mrf.mxu1  ;;  %v1693_v7 = vadd.f32 %v566_v39, %v1690_v5 }
  0xfa   : > { %v1676_v43 = vpop.f32.mrf.mxu0  ;;  %v1696_v8 = vadd.f32 %v639_v41, %v1690_v5 }
  0xfb   : > { %v1678_v44 = vpop.f32.mrf.mxu1 }
  0xfc   : > { %v572_v45 = vpop.f32.mrf.mxu0 }
  0xfd   : > { %v645_v46 = vpop.f32.mrf.mxu1  ;;  %v1699_v9 = vadd.f32 %v572_v45, %v1680_v56 }
  0xfe   : > { %v574_v47 = vpop.f32.mrf.mxu0  ;;  %v1702_v10 = vadd.f32 %v645_v46, %v1680_v56 }
  0xff   : > { %v647_v49 = vpop.f32.mrf.mxu1  ;;  %v1704_v12 = vadd.f32 %v574_v47, %v458_v58 }
 0x100   : > { %v576_v51 = vpop.f32.mrf.mxu0  ;;  %v1706_v13 = vadd.f32 %v647_v49, %v458_v58 }
 0x101   : > { %v649_v52 = vpop.f32.mrf.mxu1  ;;  %v1708_v14 = vadd.f32 %v576_v51, %v458_v58 }
 0x102   : > { %v580_v53 = vpop.f32.mrf.mxu0  ;;  %v1710_v15 = vadd.f32 %v649_v52, %v458_v58 }
 0x103   : > { %v653_v54 = vpop.f32.mrf.mxu1  ;;  %v581_v17 = vadd.f32 %v580_v53, %v1674_v42 }
 0x104   : > { %v582_v55 = vpop.f32.mrf.mxu0  ;;  %v654_v58 = vadd.f32 %v653_v54, %v1674_v42  ;;  %v565_v54 = vadd.f32 %v1670_v37, %v1690_v5  ;;  %v686_v37 = vmax.f32 %v1706_v13, 0.0 }
 0x105   : > { %v655_v57 = vpop.f32.mrf.mxu1  ;;  %v583_v27 = vadd.f32 %v582_v55, %v1674_v42 }
 0x106   : > { %v584_v59 = vpop.f32.mrf.mxu0  ;;  %v656_v28 = vadd.f32 %v655_v57, %v1674_v42 }
 0x107   : > { %v657_v60 = vpop.f32.mrf.mxu1  ;;  %v585_v32 = vadd.f32 %v584_v59, %v468_v50  ;;  %v689_v55 = vmax.f32 %v583_v27, 0.0 }
 0x108   : > { %v586_v61 = vpop.f32.mrf.mxu0  ;;  %v658_v35 = vadd.f32 %v657_v60, %v468_v50 }
 0x109   : > { %v659_v62 = vpop.f32.mrf.mxu1  ;;  %v587_v18 = vadd.f32 %v586_v61, %v468_v50 }
 0x10a   : > { %v590_v63 = vpop.f32.mrf.mxu0  ;;  %v660_v22 = vadd.f32 %v659_v62, %v468_v50  ;;  %v692_v62 = vmax.f32 %v585_v32, 0.0  ;;  %v685_v50 = vmax.f32 %v1708_v14, 0.0  ;;  %v681_v14 = vmax.f32 %v1699_v9, 0.0 }
 0x10b   : > { %v663_v2 = vpop.f32.mrf.mxu1  ;;  %v591_v23 = vadd.f32 %v590_v63, %v473_v40  ;;  %v693_v41 = vmax.f32 %v587_v18, 0.0  ;;  %v644_v18 = vadd.f32 %v1678_v44, %v1680_v56  ;;  %v679_v9 = vmax.f32 %v1696_v8, 0.0 }
 0x10c   : > { %v592_v6 = vpop.f32.mrf.mxu0  ;;  %v664_v29 = vadd.f32 %v663_v2, %v473_v40  ;;  %v695_v49 = vmax.f32 %v660_v22, 0.0  ;;  %v717_v22 = vpack.c.bf16 %v685_v50, %v681_v14 }
 0x10d   : > { %v665_v11 = vpop.f32.mrf.mxu1  ;;  %v593_v19 = vadd.f32 %v592_v6, %v473_v40  ;;  %v696_v51 = vmax.f32 %v591_v23, 0.0  ;;  %v721_v60 = vpack.c.bf16 %v693_v41, %v689_v55  ;;  %v571_v6 = vadd.f32 %v1676_v43, %v1680_v56 }
 0x10e   : > { %v594_v16 = vpop.f32.mrf.mxu0  ;;  %v666_v24 = vadd.f32 %v665_v11, %v473_v40  ;;  %v698_v61 = vmax.f32 %v664_v29, 0.0  ;;  %v691_v40 = vmax.f32 %v656_v28, 0.0  ;;  %v687_v11 = vmax.f32 %v1710_v15, 0.0  ;;  %v1346_v29 = vld [vmem:[#allocation2 + $0x10] sm:$0xff]  }
 0x10f   : > { %v595_v20 = vadd.f32 %v594_v16, %v478_v48  ;;  %v667_v21 = vpop.f32.mrf.mxu1  ;;  %v697_v45 = vmax.f32 %v593_v19, 0.0  ;;  %v688_v16 = vmax.f32 %v581_v17, 0.0  ;;  %v690_v19 = vmax.f32 %v654_v58, 0.0 }
 0x110   : > { %v668_v25 = vadd.f32 %v667_v21, %v478_v48  ;;  %v596_v26 = vpop.f32.mrf.mxu0  ;;  %v699_v52 = vmax.f32 %v666_v24, 0.0  ;;  %v723_v42 = vpack.c.bf16 %v695_v49, %v691_v40  ;;  %v638_v43 = vadd.f32 %v1672_v38, %v1690_v5  ;;  %v774_v49 = vpop.permute.xlu1 %773 }
 0x111   : > { %v597_v30 = vadd.f32 %v596_v26, %v478_v48  ;;  %v669_v31 = vpop.f32.mrf.mxu1  ;;  %v700_v36 = vmax.f32 %v595_v20, 0.0  ;;  %v683_v15 = vmax.f32 %v1702_v10, 0.0  ;;  %v684_v17 = vmax.f32 %v1704_v12, 0.0 }
 0x112   : > { %v670_v39 = vadd.f32 %v669_v31, %v478_v48  ;;  %v702_v46 = vmax.f32 %v668_v25, 0.0  ;;  %v694_v48 = vmax.f32 %v658_v35, 0.0  ;;  %v720_v20 = vpack.c.bf16 %v692_v62, %v688_v16 }
 0x113   : > { %v701_v47 = vmax.f32 %v597_v30, 0.0  ;;  %v724_v63 = vpack.c.bf16 %v700_v36, %v696_v51  ;;  %v677_v21 = vmax.f32 %v1693_v7, 0.0  ;;  %v561_v56 = vadd.f32 %v1666_v33, %v1682_v1  ;;  %v1347_v30 = vld [vmem:[#allocation2 + $0x18] sm:$0xff]  }
 0x114   : > { %v703_v53 = vmax.f32 %v670_v39, 0.0  ;;  %v726_v2 = vpack.c.bf16 %v702_v46, %v698_v61  ;;  %v722_v44 = vpack.c.bf16 %v694_v48, %v690_v19  ;;  %v680_v23 = vmax.f32 %v571_v6, 0.0  ;;  %v769_v46 = vpop.permute.xlu0 %768 }
 0x115   : > { %v725_v57 = vpack.c.bf16 %v701_v47, %v697_v45  ;;  %v719_v24 = vpack.c.bf16 %v687_v11, %v683_v15  ;;  %v634_v38 = vadd.f32 %v1668_v34, %v1682_v1  ;;  %v673_v5 = vmax.f32 %v1685_v3, 0.0  ;;  %v1344_v3 = vld [vmem:[#allocation2] sm:$0xff]  }
 0x116   : > { %v727_v59 = vpack.c.bf16 %v703_v53, %v699_v52  ;;  %v682_v10 = vmax.f32 %v644_v18, 0.0  ;;  %v675_v7 = vmax.f32 %v1688_v4, 0.0  ;;  %v676_v12 = vmax.f32 %v565_v54, 0.0  ;;  %v1345_v4 = vld [vmem:[#allocation2 + $0x8] sm:$0xff]  }
 0x117   : > { %817 = vmatprep.subr.bf16.mxu0 %v725_v57  ;;  %v716_v13 = vpack.c.bf16 %v684_v17, %v680_v23  ;;  %v678_v25 = vmax.f32 %v638_v43, 0.0  ;;  %v713_v33 = vpack.c.bf16 %v677_v21, %v673_v5  ;;  %v672_v8 = vmax.f32 %v561_v56, 0.0  ;;  %v764_v57 = vpop.permute.xlu1 %763 }
 0x118   : > { %890 = vmatprep.subr.bf16.mxu1 %v727_v59  ;;  %818 = vmatpush1.bf16.msra.mxu0 %v724_v63  ;;  %v718_v26 = vpack.c.bf16 %v686_v37, %v682_v10  ;;  %v715_v27 = vpack.c.bf16 %v679_v9, %v675_v7  ;;  %v674_v28 = vmax.f32 %v634_v38, 0.0  ;;  %v759_v55 = vpop.permute.xlu0 %758 }
 0x119   : > { %891 = vmatpush1.bf16.msra.mxu1 %v726_v2  ;;  %819 = vmatprep.subr.bf16.mxu0 %v721_v60  ;;  %v712_v34 = vpack.c.bf16 %v676_v12, %v672_v8 }
 0x11a   : > { %892 = vmatprep.subr.bf16.mxu1 %v723_v42  ;;  %v714_v1 = vpack.c.bf16 %v678_v25, %v674_v28 }
 0x11b   : > { %v754_v2 = vpop.permute.xlu1 %753 }
 0x11c   : > { %820 = vmatpush1.bf16.msra.mxu0 %v720_v20  ;;  %v1766_v48 = vpop.permute.xlu0 %748 }
 0x11d   : > { %893 = vmatpush1.bf16.msra.mxu1 %v722_v44  ;;  %821 = vmatprep.subr.bf16.mxu0 %v717_v22 }
 0x11e   : > { %894 = vmatprep.subr.bf16.mxu1 %v719_v24 }
 0x11f   : > { %v1770_v19 = vpop.permute.xlu1 %743 }
 0x120   : > { %822 = vmatpush1.bf16.msra.mxu0 %v716_v13  ;;  %v1768_v18 = vpop.permute.xlu0 %738 }
 0x121   : > { %895 = vmatpush1.bf16.msra.mxu1 %v718_v26  ;;  %823 = vmatprep.subr.bf16.mxu0 %v713_v33 }
 0x122   : > { %896 = vmatprep.subr.bf16.mxu1 %v715_v27 }
 0x124   : > { %824 = vmatpush1.bf16.msra.mxu0 %v712_v34 }
 0x125   : > { %897 = vmatpush1.bf16.msra.mxu1 %v714_v1 }
 0x127   : > { %1264 = vmatmul.mubr.msk.bf16.vlgmr.msra.gmra.mxu0 %vm796_vm2, %v1344_v3 }
 0x128   : > { %1268 = vmatmul.mubr.msk.bf16.vlgmr.msra.gmra.mxu1 %vm796_vm2, %v1344_v3  ;;  %851 = vmatprep.mubr.bf16.mxu0 %v1451_v0 }
 0x129   : > { %924 = vmatprep.mubr.bf16.mxu1 %v1451_v0 }
 0x12f   : > { %1265 = vmatmul.mubr.msk.bf16.gmra.mxu0 %vm796_vm2, %v1345_v4 }
 0x130   : > { %1269 = vmatmul.mubr.msk.bf16.gmra.mxu1 %vm796_vm2, %v1345_v4  ;;  %861 = vmatprep.mubr.bf16.mxu0 %v1451_v0 }
 0x131   : > { %934 = vmatprep.mubr.bf16.mxu1 %v1451_v0 }
 0x137   : > { %1266 = vmatmul.mubr.msk.bf16.gmra.mxu0 %vm796_vm2, %v1346_v29 }
 0x138   : > { %1270 = vmatmul.mubr.msk.bf16.gmra.mxu1 %vm796_vm2, %v1346_v29  ;;  %871 = vmatprep.mubr.bf16.mxu0 %v1451_v0 }
 0x139   : > { %944 = vmatprep.mubr.bf16.mxu1 %v1451_v0 }
 0x13f   : > { %1267 = vmatmul.mubr.msk.bf16.gmra.mxu0 %vm796_vm2, %v1347_v30 }
 0x140   : > { %1271 = vmatmul.mubr.msk.bf16.gmra.mxu1 %vm796_vm2, %v1347_v30  ;;  %1045 = vmatprep.mubr.bf16.mxu0 %v1451_v0 }
 0x141   : > { %1086 = vmatprep.mubr.bf16.mxu1 %v1451_v0 }
 0x1e7   : > { %v1754_v31 = vpop.f32.mrf.mxu0 }
 0x1e8   : > { %v1756_v32 = vpop.f32.mrf.mxu1 }
 0x1e9   : > { %v845_v35 = vpop.f32.mrf.mxu0 }
 0x1ea   : > { %v918_v36 = vpop.f32.mrf.mxu1  ;;  %v1773_v43 = vadd.f32 %v845_v35, %v1768_v18 }
 0x1eb   : > { %v1758_v39 = vpop.f32.mrf.mxu0  ;;  %v1776_v15 = vadd.f32 %v918_v36, %v1768_v18 }
 0x1ec   : > { %v1760_v41 = vpop.f32.mrf.mxu1 }
 0x1ed   : > { %v849_v45 = vpop.f32.mrf.mxu0 }
 0x1ee   : > { %v922_v47 = vpop.f32.mrf.mxu1  ;;  %v1779_v20 = vadd.f32 %v849_v45, %v1770_v19 }
 0x1ef   : > { %v1762_v51 = vpop.f32.mrf.mxu0  ;;  %v1782_v21 = vadd.f32 %v922_v47, %v1770_v19 }
 0x1f0   : > { %v1764_v52 = vpop.f32.mrf.mxu1 }
 0x1f1   : > { %v855_v53 = vpop.f32.mrf.mxu0 }
 0x1f2   : > { %v928_v0 = vpop.f32.mrf.mxu1  ;;  %v1785_v37 = vadd.f32 %v855_v53, %v1766_v48 }
 0x1f3   : > { %v857_v58 = vpop.f32.mrf.mxu0  ;;  %v1788_v22 = vadd.f32 %v928_v0, %v1766_v48 }
 0x1f4   : > { %v930_v61 = vpop.f32.mrf.mxu1  ;;  %v1790_v56 = vadd.f32 %v857_v58, %v754_v2 }
 0x1f5   : > { %v859_v40 = vpop.f32.mrf.mxu0  ;;  %v1792_v9 = vadd.f32 %v930_v61, %v754_v2 }
 0x1f6   : > { %v932_v62 = vpop.f32.mrf.mxu1  ;;  %v1794_v23 = vadd.f32 %v859_v40, %v754_v2 }
 0x1f7   : > { %v863_v63 = vpop.f32.mrf.mxu0  ;;  %v1796_v24 = vadd.f32 %v932_v62, %v754_v2 }
 0x1f8   : > { %v936_v59 = vpop.f32.mrf.mxu1  ;;  %v864_v5 = vadd.f32 %v863_v63, %v759_v55 }
 0x1f9   : > { %v865_v50 = vpop.f32.mrf.mxu0  ;;  %v937_v63 = vadd.f32 %v936_v59, %v759_v55  ;;  %v848_v59 = vadd.f32 %v1758_v39, %v1770_v19  ;;  %v969_v39 = vmax.f32 %v1792_v9, 0.0 }
 0x1fa   : > { %v938_v60 = vpop.f32.mrf.mxu1  ;;  %v866_v28 = vadd.f32 %v865_v50, %v759_v55 }
 0x1fb   : > { %v867_v6 = vpop.f32.mrf.mxu0  ;;  %v939_v34 = vadd.f32 %v938_v60, %v759_v55 }
 0x1fc   : > { %v940_v11 = vpop.f32.mrf.mxu1  ;;  %v868_v29 = vadd.f32 %v867_v6, %v764_v57  ;;  %v972_v2 = vmax.f32 %v866_v28, 0.0 }
 0x1fd   : > { %v869_v16 = vpop.f32.mrf.mxu0  ;;  %v941_v30 = vadd.f32 %v940_v11, %v764_v57  ;;  %v974_v60 = vmax.f32 %v939_v34, 0.0 }
 0x1fe   : > { %v942_v42 = vpop.f32.mrf.mxu1  ;;  %v870_v10 = vadd.f32 %v869_v16, %v764_v57 }
 0x1ff   : > { %v873_v54 = vpop.f32.mrf.mxu0  ;;  %v943_v25 = vadd.f32 %v942_v42, %v764_v57  ;;  %v968_v57 = vmax.f32 %v1794_v23, 0.0  ;;  %v977_v6 = vmax.f32 %v941_v30, 0.0  ;;  %v964_v23 = vmax.f32 %v1785_v37, 0.0 }
 0x200   : > { %v946_v14 = vpop.f32.mrf.mxu1  ;;  %v874_v33 = vadd.f32 %v873_v54, %v769_v46  ;;  %v976_v45 = vmax.f32 %v870_v10, 0.0  ;;  %v973_v10 = vmax.f32 %v937_v63, 0.0  ;;  %v962_v37 = vmax.f32 %v1782_v21, 0.0  ;;  %v1105_v63 = vpop.permute.xlu1 %1104 }
 0x201   : > { %v875_v17 = vpop.f32.mrf.mxu0  ;;  %v947_v1 = vadd.f32 %v946_v14, %v769_v46  ;;  %v978_v58 = vmax.f32 %v943_v25, 0.0  ;;  %v854_v14 = vadd.f32 %v1762_v51, %v1766_v48  ;;  %v921_v51 = vadd.f32 %v1760_v41, %v1770_v19 }
 0x202   : > { %v948_v44 = vpop.f32.mrf.mxu1  ;;  %v876_v7 = vadd.f32 %v875_v17, %v769_v46  ;;  %v979_v61 = vmax.f32 %v874_v33, 0.0  ;;  %v970_v17 = vmax.f32 %v1796_v24, 0.0  ;;  %v966_v24 = vmax.f32 %v1788_v22, 0.0 }
 0x203   : > { %v877_v38 = vpop.f32.mrf.mxu0  ;;  %v949_v26 = vadd.f32 %v948_v44, %v769_v46  ;;  %v981_v16 = vmax.f32 %v947_v1, 0.0  ;;  %v975_v46 = vmax.f32 %v868_v29, 0.0  ;;  %v971_v44 = vmax.f32 %v864_v5, 0.0 }
 0x204   : > { %v878_v12 = vadd.f32 %v877_v38, %v774_v49  ;;  %v950_v13 = vpop.f32.mrf.mxu1  ;;  %v980_v47 = vmax.f32 %v876_v7, 0.0  ;;  %v999_v55 = vpack.c.bf16 %v978_v58, %v974_v60  ;;  %v927_v38 = vadd.f32 %v1764_v52, %v1766_v48  ;;  %v1100_v58 = vld [vmem:[%s404_s23] sm:$0xff] }
 0x205   : > { %v951_v8 = vadd.f32 %v950_v13, %v774_v49  ;;  %v879_v27 = vpop.f32.mrf.mxu0  ;;  %v982_v40 = vmax.f32 %v949_v26, 0.0  ;;  %v967_v5 = vmax.f32 %v1790_v56, 0.0  ;;  %v996_v7 = vpack.c.bf16 %v975_v46, %v971_v44 }
 0x206   : > { %v880_v3 = vadd.f32 %v879_v27, %v774_v49  ;;  %v952_v4 = vpop.f32.mrf.mxu1  ;;  %v983_v35 = vmax.f32 %v878_v12, 0.0  ;;  %v960_v12 = vmax.f32 %v1779_v20, 0.0  ;;  %v993_v13 = vpack.c.bf16 %v968_v57, %v964_v23 }
 0x207   : > { %v953_v36 = vadd.f32 %v952_v4, %v774_v49  ;;  %v985_v53 = vmax.f32 %v951_v8, 0.0  ;;  %v997_v49 = vpack.c.bf16 %v976_v45, %v972_v2  ;;  %v998_v52 = vpack.c.bf16 %v977_v6, %v973_v10 }
 0x208   : > { %v984_v0 = vmax.f32 %v880_v3, 0.0  ;;  %v1000_v42 = vpack.c.bf16 %v983_v35, %v979_v61  ;;  %v844_v48 = vadd.f32 %v1754_v31, %v1768_v18  ;;  %v963_v25 = vmax.f32 %v854_v14, 0.0  ;;  %v1101_v61 = vld [vmem:[%s404_s23 + $0x8] sm:$0xff] }
 0x209   : > { %v986_v62 = vmax.f32 %v953_v36, 0.0  ;;  %v1002_v11 = vpack.c.bf16 %v985_v53, %v981_v16  ;;  %v995_v33 = vpack.c.bf16 %v970_v17, %v966_v24  ;;  %v917_v41 = vadd.f32 %v1756_v32, %v1768_v18 }
 0x20a   : > { %v1001_v50 = vpack.c.bf16 %v984_v0, %v980_v47  ;;  %v956_v19 = vmax.f32 %v1773_v43, 0.0  ;;  %v965_v22 = vmax.f32 %v927_v38, 0.0  ;;  %v958_v20 = vmax.f32 %v1776_v15, 0.0  ;;  %v987_v43 = vld [vmem:[%s1886_s5] sm:$0x3]  ;;  %v1008_v15 = vpop.permute.xlu0 %1007 }
 0x20b   : > { %v1003_v54 = vpack.c.bf16 %v986_v62, %v982_v40  ;;  %v959_v56 = vmax.f32 %v848_v59, 0.0  ;;  %v992_v9 = vpack.c.bf16 %v967_v5, %v963_v25  ;;  %v961_v26 = vmax.f32 %v921_v51, 0.0 }
 0x20c   : > { %1021 = vmatprep.subr.bf16.mxu0 %v1001_v50  ;;  %v989_v31 = vpack.c.bf16 %v960_v12, %v956_v19  ;;  %v994_v21 = vpack.c.bf16 %v969_v39, %v965_v22  ;;  %v955_v8 = vmax.f32 %v844_v48, 0.0  ;;  %v991_v27 = vpack.c.bf16 %v962_v37, %v958_v20 }
 0x20d   : > { %1062 = vmatprep.subr.bf16.mxu1 %v1003_v54  ;;  %1022 = vmatpush1.bf16.msra.mxu0 %v1000_v42  ;;  %v957_v28 = vmax.f32 %v917_v41, 0.0  ;;  %v1109_v40 = vcombine.high %v1100_v58, %v1100_v58  ;;  %v1110_v62 = vcombine.high %v1101_v61, %v1101_v61  ;;  %v1113_v50 = vmul.f32 %v1105_v63, %v1100_v58 }
 0x20e   : > { %1063 = vmatpush1.bf16.msra.mxu1 %v1002_v11  ;;  %1023 = vmatprep.subr.bf16.mxu0 %v997_v49  ;;  %v988_v32 = vpack.c.bf16 %v959_v56, %v955_v8  ;;  %v1115_v42 = vmul.f32 %v1105_v63, %v1101_v61 }
 0x20f   : > { %1064 = vmatprep.subr.bf16.mxu1 %v999_v55  ;;  %v990_v18 = vpack.c.bf16 %v961_v26, %v957_v28  ;;  %v1114_v60 = vmul.f32 %v1109_v40, %v1105_v63  ;;  %v1116_v54 = vmul.f32 %v1110_v62, %v1105_v63 }
 0x211   : > { %1024 = vmatpush1.bf16.msra.mxu0 %v996_v7 }
 0x212   : > { %1065 = vmatpush1.bf16.msra.mxu1 %v998_v52  ;;  %1025 = vmatprep.subr.bf16.mxu0 %v993_v13 }
 0x213   : > { %1066 = vmatprep.subr.bf16.mxu1 %v995_v33 }
 0x215   : > { %1026 = vmatpush1.bf16.msra.mxu0 %v992_v9 }
 0x216   : > { %1067 = vmatpush1.bf16.msra.mxu1 %v994_v21  ;;  %1027 = vmatprep.subr.bf16.mxu0 %v989_v31 }
 0x217   : > { %1068 = vmatprep.subr.bf16.mxu1 %v991_v27 }
 0x219   : > { %1028 = vmatpush1.bf16.msra.mxu0 %v988_v32 }
 0x21a   : > { %1069 = vmatpush1.bf16.msra.mxu1 %v990_v18 }
 0x21c   : > { %1272 = vmatmul.mubr.msk.bf16.vlgmr.msra.gmra.mxu0 %vm796_vm2, %v987_v43 }
 0x21d   : > { %1273 = vmatmul.mubr.msk.bf16.vlgmr.msra.gmra.mxu1 %vm796_vm2, %v987_v43 }
 0x2dc   : > { %v1047_v34 = vpop.f32.mrf.mxu0 }
 0x2dd   : > { %v1048_v1 = vadd.f32 %v1047_v34, %v1008_v15  ;;  %v1088_v3 = vpop.f32.mrf.mxu1 }
 0x2de   : > { %v1089_v4 = vadd.f32 %v1088_v3, %v1008_v15  ;;  %v1049_v29 = vpop.f32.mrf.mxu0 }
 0x2df   : > { %1348 = vtanh.f32 %v1048_v1  ;;  %v1050_v30 = vadd.f32 %v1049_v29, %v1008_v15  ;;  %v1090_v35 = vpop.f32.mrf.mxu1 }
 0x2e0   : > { %1350 = vtanh.f32 %v1089_v4  ;;  %v1091_v36 = vadd.f32 %v1090_v35, %v1008_v15  ;;  %v1051_v45 = vpop.f32.mrf.mxu0 }
 0x2e1   : > { %1352 = vtanh.f32 %v1050_v30  ;;  %v1092_v47 = vpop.f32.mrf.mxu1 }
 0x2e2   : > { %1354 = vtanh.f32 %v1091_v36  ;;  %v1052_v53 = vpop.f32.mrf.mxu0 }
 0x2e3   : > { %v1093_v0 = vpop.f32.mrf.mxu1 }
 0x2ec   : > { %v1349_v2 = vpop.eup %1348 }
 0x2ed   : > { %v1351_v16 = vpop.eup %1350  ;;  %v1117_v6 = vadd.f32 %v1349_v2, %v1113_v50 }
 0x2ee   : > { %v1353_v46 = vpop.eup %1352  ;;  %v1119_v11 = vadd.f32 %v1351_v16, %v1115_v42 }
 0x2ef   : > { %v1355_v57 = vpop.eup %1354  ;;  %v1118_v49 = vadd.f32 %v1353_v46, %v1114_v60 }
 0x2f0   : > { %v1120_v14 = vadd.f32 %v1355_v57, %v1116_v54  ;;  %1138 = sbr.rel (!%p1541_p5) target bundleno = 783 (0x30f), region = 64 }
 0x2f1   : > { %v1125_v17 = vcombine.low %v1117_v6, %v1118_v49 }
 0x2f2   : > { %v1126_v44 = vcombine.low %v1119_v11, %v1120_v14 }
 0x2f3   : > { %1129 = vst [vmem:[%s381_s24] sm:$0xff] %v1125_v17 }
 0x2f4   : > { %1130 = vst [vmem:[%s381_s24 + $0x8] sm:$0xff] %v1126_v44 }
 0x2f5   : > { %s1900_s26 = smov (!%p1141_p8, %s1140_s26), 4 }
 0x2f6   : > { %s1839_s27 = sshll.u32 %s1900_s26, 6 }
 0x2f7   : > { %s1145_s28 = ssub.s32 256, %s1839_s27 }
 0x2f8   : > { %1146 = vsyncadd %s1834_s25, %s1145_s28  ;;  %p1277_p9 = scmp.ne.s32.totalorder %s1839_s27, 0  ;;  %s1283_s16 = sshll.u32 %s1524_s13, 8 }
 0x2f9   : > { %s1149_s19 = scalar_lea.hbm %s1890_s9, %s1283_s16  ;;  %s1152_s22 = sshll.u32 %s381_s24, 4  ;;  %s1153_s22 = int_to_ptr.vmem [resolvable:$true] %s1152_s22 }
 0x2fa   : > { %s1382_s29 = scalar_lea.vmem %s1153_s22, %s1839_s27  ;;  %s1452_s23 = smov [#allocation5]  }
 0x2fb   : > { %p1383_p5 = scmp.ne.s32.totalorder %s1153_s22, %s1382_s29  ;;  %s1386_s14 = sshll.u32 %s1452_s23, 4  ;;  %s1387_s14 = int_to_ptr.vmem [resolvable:$false] %s1386_s14 }
 0x2fc   : > { %s1388_s26 = scalar_lea.vmem %s1387_s14, 512  ;;  %p1389_p12 = scmp.lt.s32.totalorder %s1153_s22, %s1387_s14 }
 0x2fd   : > { %p1384_p10 = pnand %p1383_p5, %p1277_p9  ;;  %p1390_p13 = scmp.lt.s32.totalorder %s1388_s26, %s1382_s29 }
 0x2ff   : > { %p1385_p11 = pneg %p1384_p10  ;;  %p1391_p0 = por %p1390_p13, %p1389_p12 }
 0x301   : > { %p1392_p1 = pnand %p1391_p0, %p1385_p11 }
 0x303   : > { %1395 = shalt.err (!%p1392_p1)
}
 0x304   : > { %s1396_s13 = scalar_lea.hbm %s1149_s19, %s1839_s27  ;;  %s1400_s16 = scalar_lea.hbm %s1890_s9, 960 }
 0x305   : > { %p1397_p2 = scmp.ne.s32.totalorder %s1149_s19, %s1396_s13  ;;  %p1401_p7 = scmp.lt.s32.totalorder %s1149_s19, %s1890_s9 }
 0x306   : > { %p1402_p6 = scmp.lt.s32.totalorder %s1400_s16, %s1396_s13 }
 0x307   : > { %p1398_p3 = pnand %p1397_p2, %p1277_p9 }
 0x308   : > { %p1403_p8 = por %p1402_p6, %p1401_p7 }
 0x309   : > { %p1399_p4 = pneg %p1398_p3 }
 0x30b   : > { %p1404_p5 = pnand %p1403_p8, %p1399_p4 }
 0x30d   : > { %1407 = shalt.err (!%p1404_p5)
}
 0x30e   : > { %1155 = dma.vmem_to_hbm [thread:$0]  (%p1277_p9), %s1153_s22, %s1839_s27, %s1149_s19, %s1834_s25  }
 0x30f PF: > { %p1299_p10 = scmp.ge.s32.totalorder %s1446_s12, 2  ;;  %s1164_s29 = sand.u32 1, %s1434_s30  }
 0x310   : > { %p1894_p11 = scmp.ne.s32.totalorder %s1892_s20, 0  ;;  %s1165_s23 = scalar_lea.sflag [#allocation4], %s1164_s29 }
 0x312   : > { %p1294_p12 = pnand %p1299_p10, %p1894_p11 }
 0x314   : > { %p1295_p13 = pneg %p1294_p12 }
 0x316   : > { %1429 = dma.done.wait (%p1295_p13), %s1165_s23, 256  }
 0x317   : > { %1431 = vsyncadd (%p1295_p13), %s1165_s23, 4294967040  ;;  %p20_p0 = scmp.ge.s32.totalorder %s1528_s15, 6   ;;  %s1895_s30 = smov %s1438_s10 }
 0x318   : > { %s1896_s10 = smov %s1442_s11  ;;  %s1897_s11 = smov %s1539_s18 }
 0x319   : > { %s1898_s12 = smov %s1528_s15  ;;  %22 = sbr.rel (!%p20_p0) target bundleno = 4 (0x4), region = 99 }
 0x31e   :  { %1170 = vsyncpa [#allocation3], 1 }
 0x31f   :  { %1172 = vsyncpa [#allocation3 + $0x1], 1 }
 0x320   :  { %1173 = vsyncpa [#allocation4], 1 }
 0x321   :  { %1175 = vsyncpa [#allocation4 + $0x1], 1 }

</bundles_post_ra>
